<compile_context>
chip_gen: v7x
topology: tpu7x:2x2x1
jax: 0.10.0
libtpu: 0.0.40
codegen_flags: <defaults>
</compile_context>

<pallas_src>
import jax
import jax.numpy as jnp
from jax.experimental import pallas as pl
from jax.experimental.pallas import tpu as pltpu

EPS = 1e-5
N_LAYERS = 6


def _round_up(x, m):
    return ((x + m - 1) // m) * m


# --------------------------------------------------------------------------
# Kernels
# --------------------------------------------------------------------------
def _make_feats_kernel(n_hidden, feat_total, feat_pad):
    """Dense-net prefix: x -> cat(x, fc1, ..., fc5), zero-padded to feat_pad."""

    def kernel(*refs):
        # refs = [x, (w_f, b_f) * n_hidden, feats_out]
        x_ref = refs[0]
        out_ref = refs[-1]
        feats = x_ref[...]                                   # [B, input], f32
        for k in range(n_hidden):
            w_ref = refs[1 + 2 * k]
            b_ref = refs[2 + 2 * k]
            h = jnp.dot(feats, w_ref[...],
                        preferred_element_type=jnp.float32) + b_ref[...]
            feats = jnp.concatenate([feats, h], axis=1)      # torch.cat(dim=1)
        pad = feat_pad - feat_total
        if pad > 0:  # zero-pad to a lane-dense width (multiple of 128)
            feats = jnp.concatenate(
                [feats, jnp.zeros((feats.shape[0], pad), feats.dtype)], axis=1)
        out_ref[...] = feats.astype(out_ref.dtype)

    return kernel


def _head_kernel(feats_ref, w_ref, b_ref, out_ref):
    """One lane-dense N-tile of the final Linear per grid step."""
    out_ref[...] = (
        jnp.dot(feats_ref[...], w_ref[...],
                preferred_element_type=jnp.float32) + b_ref[...]
    ).astype(out_ref.dtype)


# --------------------------------------------------------------------------
# One-time parameter packing (hoisted out of the per-call path)
# --------------------------------------------------------------------------
def fold_bn_into_linear(params):
    """Eval-mode BN folded into the following Linear (numerically equivalent)."""
    folded = []
    for (gamma, beta, mean, var, w, bias) in params:
        scale = gamma * jax.lax.rsqrt(var + EPS)           # [1, in]
        w_f = w * scale.reshape(-1, 1)                     # [in, out]
        bias_f = bias + (beta - mean * scale) @ w          # [1, out]
        folded.append((w_f.astype(jnp.float32), bias_f.astype(jnp.float32)))
    return folded


def pack_params(params, *, tile_n=4096, w_dtype=jnp.bfloat16):
    """params: list of 6 tuples (gamma, beta, mean, var, w[in,out], bias[1,out]).

    Returns a dict of ready-to-stream arrays + static config.  Call ONCE.
    """
    n_layers = len(params)
    input_size = params[0][4].shape[0]
    hidden_size = params[0][4].shape[1]
    output_size = params[-1][4].shape[1]
    feat_total = input_size + hidden_size * (n_layers - 1)
    feat_pad = _round_up(feat_total, 128)

    folded = fold_bn_into_linear(params)

    tile_n = min(_round_up(tile_n, 128), _round_up(output_size, 128))
    n_pad = _round_up(output_size, tile_n)
    n_tiles = n_pad // tile_n

    # Final layer: pad rows to feat_pad, cols to n_pad, cast to bf16, and
    # pre-block as [n_tiles, feat_pad, tile_n] so each streamed tile is one
    # fully-contiguous DMA.
    w_last, b_last = folded[-1]
    w_pad = jnp.pad(w_last, ((0, feat_pad - feat_total), (0, n_pad - output_size)))
    w_blocked = (w_pad.astype(w_dtype)
                 .reshape(feat_pad, n_tiles, tile_n)
                 .transpose(1, 0, 2))                        # [n_tiles, feat_pad, tile_n]
    b_pad = jnp.pad(b_last, ((0, 0), (0, n_pad - output_size)))
    # TODO(synk): optional int8 (v5e/v6e) or fp8-e4m3 (v7x) weight quantization
    # would halve the dominant HBM stream again; bf16 kept as the safe default.

    cfg = dict(n_hidden=n_layers - 1, input_size=input_size,
               feat_total=feat_total, feat_pad=feat_pad,
               tile_n=tile_n, n_pad=n_pad, n_tiles=n_tiles,
               output_size=output_size)
    return dict(hidden=folded[:-1], w_blocked=w_blocked, b_pad=b_pad, cfg=cfg)


# --------------------------------------------------------------------------
# Forward
# --------------------------------------------------------------------------
def neural_net_forward(x, packed):
    cfg = packed["cfg"]
    batch = x.shape[0]
    feat_pad = cfg["feat_pad"]
    tile_n = cfg["tile_n"]
    n_pad = cfg["n_pad"]
    n_tiles = cfg["n_tiles"]

    # ---- Stage 1: tiny dense-net prefix (single-shot Pallas kernel) --------
    feat_args = [x]
    for (w_f, b_f) in packed["hidden"]:
        feat_args += [w_f, b_f]
    feats = pl.pallas_call(
        _make_feats_kernel(cfg["n_hidden"], cfg["feat_total"], feat_pad),
        out_shape=jax.ShapeDtypeStruct((batch, feat_pad), jnp.bfloat16),
        grid_spec=pltpu.PrefetchScalarGridSpec(
            num_scalar_prefetch=0,
            grid=(1,),
            in_specs=[pl.BlockSpec(a.shape, lambda i: (0, 0)) for a in feat_args],
            out_specs=pl.BlockSpec((batch, feat_pad), lambda i: (0, 0)),
        ),
    )(*feat_args)

    # ---- Stage 2: stream the dominant final-layer weight in N-tiles --------
    batch_pad = _round_up(batch, 8)
    w_bytes = jnp.dtype(packed["w_blocked"].dtype).itemsize
    need = 2 * (feat_pad * tile_n * w_bytes      # double-buffered weight tile
                + 8 * tile_n * 4                 # double-buffered bias tile
                + batch_pad * tile_n * 4         # double-buffered out tile
                + batch_pad * feat_pad * 2)      # resident feats
    vmem_limit = int(min(max(2 * need, 32 * 2 ** 20), 56 * 2 ** 20))

    out = pl.pallas_call(
        _head_kernel,
        out_shape=jax.ShapeDtypeStruct((batch, n_pad), jnp.float32),
        grid_spec=pltpu.PrefetchScalarGridSpec(
            num_scalar_prefetch=0,
            grid=(n_tiles,),
            in_specs=[
                # resident features (same block every step -> DMA'd once)
                pl.BlockSpec((batch, feat_pad), lambda j: (0, 0)),
                # pre-blocked weight: one contiguous tile per step
                pl.BlockSpec((None, feat_pad, tile_n), lambda j: (j, 0, 0)),
                pl.BlockSpec((1, tile_n), lambda j: (0, j)),
            ],
            out_specs=pl.BlockSpec((batch, tile_n), lambda j: (0, j)),
        ),
        compiler_params=pltpu.CompilerParams(
            # No cross-step carry any more -> output tiles are independent and
            # the grid can be sharded across TensorCores (v7x megacore).
            dimension_semantics=("parallel",),
            vmem_limit_bytes=vmem_limit,
        ),
    )(feats, packed["w_blocked"], packed["b_pad"])
    return out[:, :cfg["output_size"]]


# --------------------------------------------------------------------------
# Synthetic parameters + pure-JAX reference
# --------------------------------------------------------------------------
def init_params(key, input_size, hidden_size, output_size):
    """Deterministic synthetic parameters matching the module's shapes."""
    params = []
    for i in range(N_LAYERS):
        in_dim = input_size + hidden_size * i
        out_dim = output_size if i == N_LAYERS - 1 else hidden_size
        key, k_g, k_b, k_m, k_v, k_w, k_bias = jax.random.split(key, 7)
        gamma = jax.random.uniform(k_g, (1, in_dim), jnp.float32, 0.5, 1.5)
        beta = 0.1 * jax.random.normal(k_b, (1, in_dim), jnp.float32)
        run_mean = 0.1 * jax.random.normal(k_m, (1, in_dim), jnp.float32)
        run_var = jax.random.uniform(k_v, (1, in_dim), jnp.float32, 0.5, 1.5)
        bound = 1.0 / (in_dim ** 0.5)
        # weight stored as [in, out] (transpose of PyTorch's [out, in])
        w = jax.random.uniform(k_w, (in_dim, out_dim), jnp.float32, -bound, bound)
        bias = jax.random.uniform(k_bias, (1, out_dim), jnp.float32, -bound, bound)
        params.append((gamma, beta, run_mean, run_var, w, bias))
    return params


def reference_forward(x, params):
    """Pure-JAX f32 reference mirroring the PyTorch forward (eval-mode BN)."""
    feats = x
    out = None
    for i, (g, b, m, v, w, bias) in enumerate(params):
        normed = (feats - m) * (g / jnp.sqrt(v + EPS)) + b
        out = normed @ w + bias
        if i < len(params) - 1:
            feats = jnp.concatenate([feats, out], axis=1)
    return out


if __name__ == "__main__":
    # Small stand-ins for the real module (input=240, hidden=100, output=53539).
    # OUTPUT_SIZE and INPUT_SIZE deliberately NOT multiples of 128 to exercise
    # the padding paths; tile_n=256 gives a 3-step grid over output tiles.
    BATCH, INPUT_SIZE, HIDDEN_SIZE, OUTPUT_SIZE = 8, 48, 24, 515

    key = jax.random.PRNGKey(0)
    key, kx = jax.random.split(key)
    x = jax.random.normal(kx, (BATCH, INPUT_SIZE), jnp.float32)
    params = init_params(key, INPUT_SIZE, HIDDEN_SIZE, OUTPUT_SIZE)

    # One-time packing (BN fold + pad + bf16 cast + pre-blocking), then reuse.
    packed = pack_params(params, tile_n=256)
    packed["w_blocked"] = jax.block_until_ready(packed["w_blocked"])

    out = neural_net_forward(x, packed)
    out = jax.block_until_ready(out)

    ref = jax.block_until_ready(reference_forward(x, params))
    assert out.shape == (BATCH, OUTPUT_SIZE)
    max_err = float(jnp.max(jnp.abs(out - ref)))
    # bf16 final weight / bf16 feats -> loose-ish tolerance vs f32 reference.
    assert jnp.allclose(out, ref, rtol=2e-2, atol=2e-2), (
        f"mismatch vs JAX reference (max abs err {max_err})")

    print("KERNEL_OK")
</pallas_src>

<mosaic_0001>
module attributes {stable_mosaic.version = 11 : i64} {
  func.func @kernel(%arg0: i32, %arg1: memref<8x48xf32, #tpu.memory_space<vmem>>, %arg2: memref<48x24xf32, #tpu.memory_space<vmem>>, %arg3: memref<1x24xf32, #tpu.memory_space<vmem>>, %arg4: memref<72x24xf32, #tpu.memory_space<vmem>>, %arg5: memref<1x24xf32, #tpu.memory_space<vmem>>, %arg6: memref<96x24xf32, #tpu.memory_space<vmem>>, %arg7: memref<1x24xf32, #tpu.memory_space<vmem>>, %arg8: memref<120x24xf32, #tpu.memory_space<vmem>>, %arg9: memref<1x24xf32, #tpu.memory_space<vmem>>, %arg10: memref<144x24xf32, #tpu.memory_space<vmem>>, %arg11: memref<1x24xf32, #tpu.memory_space<vmem>>, %arg12: memref<8x256xbf16, #tpu.memory_space<vmem>>) attributes {dimension_semantics = [#tpu.dimension_semantics<arbitrary>], iteration_bounds = array<i64: 1>, scalar_prefetch = 0 : i64, scratch_operands = 0 : i64, tpu.core_type = #tpu.core_type<tc>, window_params = [{pipeline_mode = #tpu.pipeline_mode<synchronous>, transform_indices = @transform_0, window_bounds = array<i64: 8, 48>}, {pipeline_mode = #tpu.pipeline_mode<synchronous>, transform_indices = @transform_1, window_bounds = array<i64: 48, 24>}, {pipeline_mode = #tpu.pipeline_mode<synchronous>, transform_indices = @transform_2, window_bounds = array<i64: 1, 24>}, {pipeline_mode = #tpu.pipeline_mode<synchronous>, transform_indices = @transform_3, window_bounds = array<i64: 72, 24>}, {pipeline_mode = #tpu.pipeline_mode<synchronous>, transform_indices = @transform_4, window_bounds = array<i64: 1, 24>}, {pipeline_mode = #tpu.pipeline_mode<synchronous>, transform_indices = @transform_5, window_bounds = array<i64: 96, 24>}, {pipeline_mode = #tpu.pipeline_mode<synchronous>, transform_indices = @transform_6, window_bounds = array<i64: 1, 24>}, {pipeline_mode = #tpu.pipeline_mode<synchronous>, transform_indices = @transform_7, window_bounds = array<i64: 120, 24>}, {pipeline_mode = #tpu.pipeline_mode<synchronous>, transform_indices = @transform_8, window_bounds = array<i64: 1, 24>}, {pipeline_mode = #tpu.pipeline_mode<synchronous>, transform_indices = @transform_9, window_bounds = array<i64: 144, 24>}, {pipeline_mode = #tpu.pipeline_mode<synchronous>, transform_indices = @transform_10, window_bounds = array<i64: 1, 24>}, {pipeline_mode = #tpu.pipeline_mode<synchronous>, transform_indices = @transform_11, window_bounds = array<i64: 8, 256>}]} {
    %c0 = arith.constant 0 : index
    %c0_0 = arith.constant 0 : index
    %0 = vector.load %arg1[%c0, %c0_0] : memref<8x48xf32, #tpu.memory_space<vmem>>, vector<8x48xf32>
    %c0_1 = arith.constant 0 : index
    %c0_2 = arith.constant 0 : index
    %1 = vector.load %arg2[%c0_1, %c0_2] : memref<48x24xf32, #tpu.memory_space<vmem>>, vector<48x24xf32>
    %cst = arith.constant dense<0.000000e+00> : vector<8x24xf32>
    %2 = tpu.matmul %0, %1, %cst {dimension_numbers = #tpu.dot_dimension_numbers<[1], [0], [0], [1], [0, 0, 1, 1], [], []>} : vector<8x48xf32>, vector<48x24xf32>, vector<8x24xf32> -> vector<8x24xf32>
    %c0_3 = arith.constant 0 : index
    %c0_4 = arith.constant 0 : index
    %3 = vector.load %arg3[%c0_3, %c0_4] : memref<1x24xf32, #tpu.memory_space<vmem>>, vector<1x24xf32>
    %4 = vector.broadcast %3 : vector<1x24xf32> to vector<8x24xf32>
    %5 = arith.addf %2, %4 : vector<8x24xf32>
    %6 = tpu.concatenate %0, %5 in 1 : vector<8x48xf32>, vector<8x24xf32> -> vector<8x72xf32>
    %c0_5 = arith.constant 0 : index
    %c0_6 = arith.constant 0 : index
    %7 = vector.load %arg4[%c0_5, %c0_6] : memref<72x24xf32, #tpu.memory_space<vmem>>, vector<72x24xf32>
    %cst_7 = arith.constant dense<0.000000e+00> : vector<8x24xf32>
    %8 = tpu.matmul %6, %7, %cst_7 {dimension_numbers = #tpu.dot_dimension_numbers<[1], [0], [0], [1], [0, 0, 1, 1], [], []>} : vector<8x72xf32>, vector<72x24xf32>, vector<8x24xf32> -> vector<8x24xf32>
    %c0_8 = arith.constant 0 : index
    %c0_9 = arith.constant 0 : index
    %9 = vector.load %arg5[%c0_8, %c0_9] : memref<1x24xf32, #tpu.memory_space<vmem>>, vector<1x24xf32>
    %10 = vector.broadcast %9 : vector<1x24xf32> to vector<8x24xf32>
    %11 = arith.addf %8, %10 : vector<8x24xf32>
    %12 = tpu.concatenate %6, %11 in 1 : vector<8x72xf32>, vector<8x24xf32> -> vector<8x96xf32>
    %c0_10 = arith.constant 0 : index
    %c0_11 = arith.constant 0 : index
    %13 = vector.load %arg6[%c0_10, %c0_11] : memref<96x24xf32, #tpu.memory_space<vmem>>, vector<96x24xf32>
    %cst_12 = arith.constant dense<0.000000e+00> : vector<8x24xf32>
    %14 = tpu.matmul %12, %13, %cst_12 {dimension_numbers = #tpu.dot_dimension_numbers<[1], [0], [0], [1], [0, 0, 1, 1], [], []>} : vector<8x96xf32>, vector<96x24xf32>, vector<8x24xf32> -> vector<8x24xf32>
    %c0_13 = arith.constant 0 : index
    %c0_14 = arith.constant 0 : index
    %15 = vector.load %arg7[%c0_13, %c0_14] : memref<1x24xf32, #tpu.memory_space<vmem>>, vector<1x24xf32>
    %16 = vector.broadcast %15 : vector<1x24xf32> to vector<8x24xf32>
    %17 = arith.addf %14, %16 : vector<8x24xf32>
    %18 = tpu.concatenate %12, %17 in 1 : vector<8x96xf32>, vector<8x24xf32> -> vector<8x120xf32>
    %c0_15 = arith.constant 0 : index
    %c0_16 = arith.constant 0 : index
    %19 = vector.load %arg8[%c0_15, %c0_16] : memref<120x24xf32, #tpu.memory_space<vmem>>, vector<120x24xf32>
    %cst_17 = arith.constant dense<0.000000e+00> : vector<8x24xf32>
    %20 = tpu.matmul %18, %19, %cst_17 {dimension_numbers = #tpu.dot_dimension_numbers<[1], [0], [0], [1], [0, 0, 1, 1], [], []>} : vector<8x120xf32>, vector<120x24xf32>, vector<8x24xf32> -> vector<8x24xf32>
    %c0_18 = arith.constant 0 : index
    %c0_19 = arith.constant 0 : index
    %21 = vector.load %arg9[%c0_18, %c0_19] : memref<1x24xf32, #tpu.memory_space<vmem>>, vector<1x24xf32>
    %22 = vector.broadcast %21 : vector<1x24xf32> to vector<8x24xf32>
    %23 = arith.addf %20, %22 : vector<8x24xf32>
    %24 = tpu.concatenate %18, %23 in 1 : vector<8x120xf32>, vector<8x24xf32> -> vector<8x144xf32>
    %c0_20 = arith.constant 0 : index
    %c0_21 = arith.constant 0 : index
    %25 = vector.load %arg10[%c0_20, %c0_21] : memref<144x24xf32, #tpu.memory_space<vmem>>, vector<144x24xf32>
    %cst_22 = arith.constant dense<0.000000e+00> : vector<8x24xf32>
    %26 = tpu.matmul %24, %25, %cst_22 {dimension_numbers = #tpu.dot_dimension_numbers<[1], [0], [0], [1], [0, 0, 1, 1], [], []>} : vector<8x144xf32>, vector<144x24xf32>, vector<8x24xf32> -> vector<8x24xf32>
    %c0_23 = arith.constant 0 : index
    %c0_24 = arith.constant 0 : index
    %27 = vector.load %arg11[%c0_23, %c0_24] : memref<1x24xf32, #tpu.memory_space<vmem>>, vector<1x24xf32>
    %28 = vector.broadcast %27 : vector<1x24xf32> to vector<8x24xf32>
    %29 = arith.addf %26, %28 : vector<8x24xf32>
    %30 = tpu.concatenate %24, %29 in 1 : vector<8x144xf32>, vector<8x24xf32> -> vector<8x168xf32>
    %cst_25 = arith.constant 0.000000e+00 : f32
    %31 = vector.broadcast %cst_25 : f32 to vector<8x88xf32>
    %32 = tpu.concatenate %30, %31 in 1 : vector<8x168xf32>, vector<8x88xf32> -> vector<8x256xf32>
    %33 = arith.truncf %32 : vector<8x256xf32> to vector<8x256xbf16>
    %c0_26 = arith.constant 0 : index
    %c0_27 = arith.constant 0 : index
    %34 = vector.load %arg12[%c0_26, %c0_27] : memref<8x256xbf16, #tpu.memory_space<vmem>>, vector<8x256xbf16>
    tpu.vector_store %arg12[%c0_26, %c0_27], %33 {strides = array<i32>} : memref<8x256xbf16, #tpu.memory_space<vmem>>, vector<8x256xbf16>,
    return
  }
  func.func @transform_0(%arg0: i32) -> (i32, i32) {
    %c0_i32 = arith.constant 0 : i32
    %c0_i32_0 = arith.constant 0 : i32
    %c0_i32_1 = arith.constant 0 : i32
    return %c0_i32, %c0_i32_0 : i32, i32
  }
  func.func @transform_1(%arg0: i32) -> (i32, i32) {
    %c0_i32 = arith.constant 0 : i32
    %c0_i32_0 = arith.constant 0 : i32
    %c0_i32_1 = arith.constant 0 : i32
    return %c0_i32, %c0_i32_0 : i32, i32
  }
  func.func @transform_2(%arg0: i32) -> (i32, i32) {
    %c0_i32 = arith.constant 0 : i32
    %c0_i32_0 = arith.constant 0 : i32
    %c0_i32_1 = arith.constant 0 : i32
    return %c0_i32, %c0_i32_0 : i32, i32
  }
  func.func @transform_3(%arg0: i32) -> (i32, i32) {
    %c0_i32 = arith.constant 0 : i32
    %c0_i32_0 = arith.constant 0 : i32
    %c0_i32_1 = arith.constant 0 : i32
    return %c0_i32, %c0_i32_0 : i32, i32
  }
  func.func @transform_4(%arg0: i32) -> (i32, i32) {
    %c0_i32 = arith.constant 0 : i32
    %c0_i32_0 = arith.constant 0 : i32
    %c0_i32_1 = arith.constant 0 : i32
    return %c0_i32, %c0_i32_0 : i32, i32
  }
  func.func @transform_5(%arg0: i32) -> (i32, i32) {
    %c0_i32 = arith.constant 0 : i32
    %c0_i32_0 = arith.constant 0 : i32
    %c0_i32_1 = arith.constant 0 : i32
    return %c0_i32, %c0_i32_0 : i32, i32
  }
  func.func @transform_6(%arg0: i32) -> (i32, i32) {
    %c0_i32 = arith.constant 0 : i32
    %c0_i32_0 = arith.constant 0 : i32
    %c0_i32_1 = arith.constant 0 : i32
    return %c0_i32, %c0_i32_0 : i32, i32
  }
  func.func @transform_7(%arg0: i32) -> (i32, i32) {
    %c0_i32 = arith.constant 0 : i32
    %c0_i32_0 = arith.constant 0 : i32
    %c0_i32_1 = arith.constant 0 : i32
    return %c0_i32, %c0_i32_0 : i32, i32
  }
  func.func @transform_8(%arg0: i32) -> (i32, i32) {
    %c0_i32 = arith.constant 0 : i32
    %c0_i32_0 = arith.constant 0 : i32
    %c0_i32_1 = arith.constant 0 : i32
    return %c0_i32, %c0_i32_0 : i32, i32
  }
  func.func @transform_9(%arg0: i32) -> (i32, i32) {
    %c0_i32 = arith.constant 0 : i32
    %c0_i32_0 = arith.constant 0 : i32
    %c0_i32_1 = arith.constant 0 : i32
    return %c0_i32, %c0_i32_0 : i32, i32
  }
  func.func @transform_10(%arg0: i32) -> (i32, i32) {
    %c0_i32 = arith.constant 0 : i32
    %c0_i32_0 = arith.constant 0 : i32
    %c0_i32_1 = arith.constant 0 : i32
    return %c0_i32, %c0_i32_0 : i32, i32
  }
  func.func @transform_11(%arg0: i32) -> (i32, i32) {
    %c0_i32 = arith.constant 0 : i32
    %c0_i32_0 = arith.constant 0 : i32
    %c0_i32_1 = arith.constant 0 : i32
    return %c0_i32, %c0_i32_0 : i32, i32
  }
}

</mosaic_0001>

<bundles_post_ra>
// kernel: tpu_custom_call.1
= control target key start
LH: loop header
LB: loop body
LE: loop exit
PB: predicated region body
PF: predicated region fallthrough
CT: control target
= control target key end

     0   :  { %v828_v3 = vmov 0.0|0.0   ;;  %vm829_vm0 = vmmov 0   ;;  %v830_v6 = vmov 0.0   ;;  %s1154_s0 = inlined_call_operand.vmem [shape: f32[8,48], index: 0, kind: input, shape index: {}]   ;;  %s1155_s1 = inlined_call_operand.vmem [shape: f32[48,24], index: 1, kind: input, shape index: {}]   ;;  %s1156_s2 = inlined_call_operand.vmem [shape: f32[1,24], index: 2, kind: input, shape index: {}]   ;;  %s1157_s3 = inlined_call_operand.vmem [shape: f32[72,24], index: 3, kind: input, shape index: {}]   ;;  %s1158_s4 = inlined_call_operand.vmem [shape: f32[1,24], index: 4, kind: input, shape index: {}]   ;;  %s1159_s5 = inlined_call_operand.vmem [shape: f32[96,24], index: 5, kind: input, shape index: {}]   ;;  %s1160_s6 = inlined_call_operand.vmem [shape: f32[1,24], index: 6, kind: input, shape index: {}]   ;;  %s1161_s7 = inlined_call_operand.vmem [shape: f32[120,24], index: 7, kind: input, shape index: {}]   ;;  %s1162_s8 = inlined_call_operand.vmem [shape: f32[1,24], index: 8, kind: input, shape index: {}]   ;;  %s1163_s9 = inlined_call_operand.vmem [shape: f32[144,24], index: 9, kind: input, shape index: {}]   ;;  %s1164_s10 = inlined_call_operand.vmem [shape: f32[1,24], index: 10, kind: input, shape index: {}]   ;;  %s1165_s11 = inlined_call_operand.hbm [shape: bf16[8,256], index: 11, kind: output, shape index: {}]  }
   0x1   :  { %v40_v0 = vld [vmem:[%s1155_s1] sm:$0xff]  ;;  %v41_v1 = vld [vmem:[%s1155_s1 + $0x8] sm:$0xff]  ;;  %v42_v2 = vld [vmem:[%s1155_s1 + $0x10] sm:$0xff]  ;;  %708 = vmatprep.subr.bf16.mxu1 %v828_v3  ;;  %624 = vmatprep.mubr.msk.f32.mxu1 %vm829_vm0, %v830_v6 }
   0x2   :  { %v709_v4 = vpack.c.bf16 %v41_v1, %v40_v0  ;;  %v43_v5 = vld [vmem:[%s1155_s1 + $0x18] sm:$0xff]  ;;  %729 = vmatprep.subr.bf16.mxu0 %v828_v3  ;;  %672 = vmatprep.mubr.msk.f32.mxu0 %vm829_vm0, %v830_v6 }
   0x3   :  { %16 = vsyncpa [#allocation3], 0  ;;  %v712_v7 = vpack.c.bf16 %v43_v5, %v42_v2  ;;  %v44_v8 = vld [vmem:[%s1155_s1 + $0x20] sm:$0xff]  ;;  %v45_v9 = vld [vmem:[%s1155_s1 + $0x28] sm:$0xff]  ;;  %vm53_vm1 = vcmask 392192   ;;  %s831_s30 = smov 48  }
   0x4   :  { %710 = vmatpush3.bf16.msra.mxu1 %v709_v4  ;;  %v715_v10 = vpack.c.bf16 %v45_v9, %v44_v8  ;;  %v39_v11 = vld [vmem:[%s1154_s0] sm:$0xff]  ;;  %v133_v13 = vld [vmem:[%s1157_s3 + $0x8] sm:$0xff]  ;;  %v134_v14 = vld [vmem:[%s1157_s3 + $0x10] sm:$0xff]  ;;  %vm148_vm2 = vcmask 588800   ;;  %vm246_vm3 = vcmask 785408   ;;  %s833_s17 = smov 96  }
   0x5   :  { %711 = vmatprep.subr.bf16.mxu1 %v828_v3  ;;  %v132_v12 = vld [vmem:[%s1157_s3] sm:$0xff]  ;;  %v135_v16 = vld [vmem:[%s1157_s3 + $0x18] sm:$0xff]  ;;  %v137_v19 = vld [vmem:[%s1157_s3 + $0x28] sm:$0xff]  ;;  %vm347_vm4 = vcmask 982016   ;;  %s834_s27 = smov 120   ;;  %vm451_vm5 = vcmask 130048  }
   0x6   :  { %v718_v15 = vpack.c.bf16 %v133_v13, %v132_v12  ;;  %v721_v17 = vpack.c.bf16 %v135_v16, %v134_v14  ;;  %v136_v18 = vld [vmem:[%s1157_s3 + $0x20] sm:$0xff]  ;;  %v138_v21 = vld [vmem:[%s1157_s3 + $0x30] sm:$0xff]  ;;  %v139_v22 = vld [vmem:[%s1157_s3 + $0x38] sm:$0xff]  ;;  %s835_s29 = smov 16   ;;  %vm529_vm6 = vcmask 326656  }
   0x7   :  { %v724_v20 = vpack.c.bf16 %v137_v19, %v136_v18  ;;  %v727_v23 = vpack.c.bf16 %v139_v22, %v138_v21  ;;  %v140_v24 = vld [vmem:[%s1157_s3 + $0x40] sm:$0xff]  ;;  %v228_v32 = vld [vmem:[%s1159_s5 + $0x8] sm:$0xff]  ;;  %v229_v33 = vld [vmem:[%s1159_s5 + $0x10] sm:$0xff] }
   0x8   :  { %713 = vmatpush3.bf16.msra.mxu1 %v712_v7  ;;  %v554_v25 = vld [vmem:[%s1156_s2] ss:$0 sm:$0xff]  ;;  %v230_v35 = vld [vmem:[%s1159_s5 + $0x18] sm:$0xff]  ;;  %v232_v38 = vld [vmem:[%s1159_s5 + $0x28] sm:$0xff]  ;;  %s832_s2 = smov 72  }
   0x9   :  { %714 = vmatprep.subr.bf16.mxu1 %v828_v3  ;;  %v227_v31 = vld [vmem:[%s1159_s5] sm:$0xff]  ;;  %v733_v36 = vpack.c.bf16 %v230_v35, %v229_v33  ;;  %v233_v40 = vld [vmem:[%s1159_s5 + $0x30] sm:$0xff]  ;;  %v234_v41 = vld [vmem:[%s1159_s5 + $0x38] sm:$0xff] }
   0xa   :  { %v730_v34 = vpack.c.bf16 %v228_v32, %v227_v31  ;;  %v231_v37 = vld [vmem:[%s1159_s5 + $0x20] sm:$0xff]  ;;  %v739_v42 = vpack.c.bf16 %v234_v41, %v233_v40  ;;  %v236_v44 = vld [vmem:[%s1159_s5 + $0x48] sm:$0xff]  ;;  %v237_v46 = vld [vmem:[%s1159_s5 + $0x50] sm:$0xff] }
   0xb   :  { %v736_v39 = vpack.c.bf16 %v232_v38, %v231_v37  ;;  %v235_v43 = vld [vmem:[%s1159_s5 + $0x40] sm:$0xff]  ;;  %v238_v47 = vld [vmem:[%s1159_s5 + $0x58] sm:$0xff]  ;;  %v326_v56 = vld [vmem:[%s1161_s7 + $0x8] sm:$0xff] }
   0xc   :  { %716 = vmatpush3.bf16.msra.mxu1 %v715_v10  ;;  %731 = vmatpush3.bf16.msra.mxu0 %v730_v34  ;;  %v742_v45 = vpack.c.bf16 %v236_v44, %v235_v43  ;;  %v745_v48 = vpack.c.bf16 %v238_v47, %v237_v46  ;;  %v556_v49 = vld [vmem:[%s1158_s4] ss:$0 sm:$0xff]  ;;  %v327_v57 = vld [vmem:[%s1161_s7 + $0x10] sm:$0xff]  ;;  %v328_v59 = vld [vmem:[%s1161_s7 + $0x18] sm:$0xff] }
   0xd   :  { %717 = vmatprep.subr.bf16.mxu1 %v828_v3  ;;  %732 = vmatprep.subr.bf16.mxu0 %v828_v3  ;;  %v325_v55 = vld [vmem:[%s1161_s7] sm:$0xff]  ;;  %v751_v60 = vpack.c.bf16 %v328_v59, %v327_v57  ;;  %v330_v62 = vld [vmem:[%s1161_s7 + $0x28] sm:$0xff]  ;;  %v331_v0 = vld [vmem:[%s1161_s7 + $0x30] sm:$0xff] }
   0xe   :  { %v748_v58 = vpack.c.bf16 %v326_v56, %v325_v55  ;;  %v329_v61 = vld [vmem:[%s1161_s7 + $0x20] sm:$0xff]  ;;  %v332_v1 = vld [vmem:[%s1161_s7 + $0x38] sm:$0xff]  ;;  %v334_v5 = vld [vmem:[%s1161_s7 + $0x48] sm:$0xff] }
   0xf   :  { %625 = vmatmul.mubr.msk.f32.vlgmr.msra.gmra.mrb[0].mxu1 %vm53_vm1, %v39_v11  ;;  %v754_v63 = vpack.c.bf16 %v330_v62, %v329_v61  ;;  %v757_v2 = vpack.c.bf16 %v332_v1, %v331_v0  ;;  %v333_v4 = vld [vmem:[%s1161_s7 + $0x40] sm:$0xff]  ;;  %v335_v8 = vld [vmem:[%s1161_s7 + $0x50] sm:$0xff]  ;;  %v336_v9 = vld [vmem:[%s1161_s7 + $0x58] sm:$0xff] }
  0x10   :  { %645 = vmatprep.mubr.msk.f32.mxu1 %vm829_vm0, %v830_v6  ;;  %719 = vmatpush3.bf16.msra.mxu1 %v718_v15  ;;  %v760_v7 = vpack.c.bf16 %v334_v5, %v333_v4  ;;  %v763_v10 = vpack.c.bf16 %v336_v9, %v335_v8  ;;  %v338_v12 = vld [vmem:[%s1161_s7 + $0x68] sm:$0xff]  ;;  %v339_v14 = vld [vmem:[%s1161_s7 + $0x70] sm:$0xff]  ;;  %v558_v15 = vld [vmem:[%s1160_s6] ss:$0 sm:$0xff] }
  0x11   :  { %720 = vmatprep.subr.bf16.mxu1 %v828_v3  ;;  %734 = vmatpush3.bf16.msra.mxu0 %v733_v36  ;;  %v427_v21 = vld [vmem:[%s1163_s9 + $0x8] sm:$0xff]  ;;  %v428_v22 = vld [vmem:[%s1163_s9 + $0x10] sm:$0xff]  ;;  %v434_v32 = vld [vmem:[%s1163_s9 + $0x40] sm:$0xff] }
  0x12   :  { %735 = vmatprep.subr.bf16.mxu0 %v828_v3  ;;  %v435_v33 = vld [vmem:[%s1163_s9 + $0x48] sm:$0xff]  ;;  %v436_v35 = vld [vmem:[%s1163_s9 + $0x50] sm:$0xff]  ;;  %v437_v36 = vld [vmem:[%s1163_s9 + $0x58] sm:$0xff] }
  0x13   :  { %v781_v34 = vpack.c.bf16 %v435_v33, %v434_v32  ;;  %v784_v37 = vpack.c.bf16 %v437_v36, %v436_v35  ;;  %v438_v38 = vld [vmem:[%s1163_s9 + $0x60] sm:$0xff]  ;;  %v440_v41 = vld [vmem:[%s1163_s9 + $0x70] sm:$0xff] }
  0x14   :  { %722 = vmatpush3.bf16.msra.mxu1 %v721_v17  ;;  %v442_v44 = vld [vmem:[%s1163_s9 + $0x80] sm:$0xff] }
  0x15   :  { %723 = vmatprep.subr.bf16.mxu1 %v828_v3  ;;  %737 = vmatpush3.bf16.msra.mxu0 %v736_v39  ;;  %v439_v39 = vld [vmem:[%s1163_s9 + $0x68] sm:$0xff]  ;;  %v560_v47 = vld [vmem:[%s1162_s8] ss:$0 sm:$0xff]  ;;  %s836_s8 = smov [#allocation2]  }
  0x16   :  { %738 = vmatprep.subr.bf16.mxu0 %v828_v3  ;;  %v787_v40 = vpack.c.bf16 %v439_v39, %v438_v38 }
  0x18   :  { %725 = vmatpush3.bf16.msra.mxu1 %v724_v20 }
  0x19   :  { %726 = vmatprep.subr.bf16.mxu1 %v828_v3  ;;  %740 = vmatpush3.bf16.msra.mxu0 %v739_v42  ;;  %v441_v42 = vld [vmem:[%s1163_s9 + $0x78] sm:$0xff] }
  0x1a   :  { %741 = vmatprep.subr.bf16.mxu0 %v828_v3  ;;  %v790_v43 = vpack.c.bf16 %v441_v42, %v440_v41 }
  0x1c   :  { %728 = vmatpush3.bf16.msra.mxu1 %v727_v23 }
  0x1d   :  { %643 = vmatprep.subr.mxu1 %v830_v6  ;;  %743 = vmatpush3.bf16.msra.mxu0 %v742_v45  ;;  %v443_v45 = vld [vmem:[%s1163_s9 + $0x88] sm:$0xff] }
  0x1e   :  { %744 = vmatprep.subr.bf16.mxu0 %v828_v3  ;;  %v793_v46 = vpack.c.bf16 %v443_v45, %v442_v44 }
  0x20   :  { %644 = vmatpush3.msra.mxu1 %v140_v24  ;;  %v429_v24 = vld [vmem:[%s1163_s9 + $0x18] sm:$0xff] }
  0x21   :  { %747 = vmatprep.subr.bf16.mxu1 %v828_v3  ;;  %746 = vmatpush3.bf16.msra.mxu0 %v745_v48 }
  0x22   :  { %768 = vmatprep.subr.bf16.mxu0 %v828_v3 }
  0xe2   :  { %v123_v26 = vpop.f32.mrb[0].mxu1 }
  0xe3   :  { %v124_v27 = vadd.f32 %v554_v25, %v123_v26  ;;  %v626_v28 = vpop.f32.mrb[1].mxu1  ;;  %v772_v25 = vpack.c.bf16 %v429_v24, %v428_v22  ;;  %v430_v26 = vld [vmem:[%s1163_s9 + $0x20] sm:$0xff] }
  0xe5   :  { %128 = vrot.lane.b32.xlu0 %v124_v27, %s831_s30  ;;  %v431_v27 = vld [vmem:[%s1163_s9 + $0x28] sm:$0xff]  ;;  %s546_s30 = sshll.u32 %s836_s8, 4  ;;  %s547_s30 = int_to_ptr.vmem [resolvable:$true] %s546_s30 }
  0xe6   :  { %v775_v28 = vpack.c.bf16 %v431_v27, %v430_v26  ;;  %s804_s3 = scalar_lea.vmem %s547_s30, 128  ;;  %p809_p1 = scmp.lt.s32.totalorder %s547_s30, %s547_s30 }
  0xe7   :  { %p805_p0 = scmp.ne.s32.totalorder %s547_s30, %s804_s3  ;;  %p810_p2 = scmp.lt.s32.totalorder %s804_s3, %s804_s3 }
  0xe9   :  { %p811_p3 = por %p810_p2, %p809_p1 }
  0xeb   :  { %p812_p4 = pnand %p811_p3, %p805_p0 }
 0x157   :  { %v129_v29 = vpop.permute.xlu0 %128 }
 0x158   :  { %v131_v30 = vsel %vm53_vm1, %v39_v11, %v129_v29  ;;  %v337_v11 = vld [vmem:[%s1161_s7 + $0x60] sm:$0xff]  ;;  %v432_v29 = vld [vmem:[%s1163_s9 + $0x30] sm:$0xff] }
 0x159   :  { %646 = vmatmul.mubr.msk.f32.vlgmr.msra.gmra.mrb[2].mxu1 %vm148_vm2, %v131_v30  ;;  %v766_v13 = vpack.c.bf16 %v338_v12, %v337_v11 }
 0x15a   :  { %705 = vmatprep.mubr.msk.f32.mxu1 %vm829_vm0, %v830_v6  ;;  %749 = vmatpush3.bf16.msra.mxu1 %v748_v58 }
 0x15b   :  { %750 = vmatprep.subr.bf16.mxu1 %v828_v3 }
 0x15e   :  { %752 = vmatpush3.bf16.msra.mxu1 %v751_v60 }
 0x15f   :  { %753 = vmatprep.subr.bf16.mxu1 %v828_v3 }
 0x162   :  { %755 = vmatpush3.bf16.msra.mxu1 %v754_v63 }
 0x163   :  { %756 = vmatprep.subr.bf16.mxu1 %v828_v3 }
 0x166   :  { %758 = vmatpush3.bf16.msra.mxu1 %v757_v2 }
 0x167   :  { %759 = vmatprep.subr.bf16.mxu1 %v828_v3 }
 0x16a   :  { %761 = vmatpush3.bf16.msra.mxu1 %v760_v7 }
 0x16b   :  { %762 = vmatprep.subr.bf16.mxu1 %v828_v3 }
 0x16e   :  { %764 = vmatpush3.bf16.msra.mxu1 %v763_v10 }
 0x16f   :  { %765 = vmatprep.subr.bf16.mxu1 %v828_v3 }
 0x172   :  { %767 = vmatpush3.bf16.msra.mxu1 %v766_v13 }
 0x173   :  { %703 = vmatprep.subr.mxu1 %v830_v6  ;;  %v426_v6 = vld [vmem:[%s1163_s9] sm:$0xff] }
 0x174   :  { %v769_v23 = vpack.c.bf16 %v427_v21, %v426_v6 }
 0x176   :  { %704 = vmatpush3.msra.mxu1 %v339_v14 }
 0x22c   :  { %v218_v50 = vpop.f32.mrb[2].mxu1 }
 0x22d   :  { %v219_v51 = vadd.f32 %v556_v49, %v218_v50  ;;  %v647_v52 = vpop.f32.mrb[3].mxu1 }
 0x22f   :  { %223 = vrot.lane.b32.xlu0 %v219_v51, %s832_s2 }
 0x2a1   :  { %v224_v53 = vpop.permute.xlu0 %223 }
 0x2a2   :  { %v226_v54 = vsel %vm148_vm2, %v131_v30, %v224_v53  ;;  %v433_v30 = vld [vmem:[%s1163_s9 + $0x38] sm:$0xff] }
 0x2a3   :  { %673 = vmatmul.mubr.msk.f32.vlgmr.msra.gmra.mrb[0].mxu0 %vm246_vm3, %v226_v54  ;;  %v778_v31 = vpack.c.bf16 %v433_v30, %v432_v29 }
 0x2a4   :  { %770 = vmatpush1.bf16.msra.mxu0 %v769_v23 }
 0x2a5   :  { %771 = vmatprep.subr.bf16.mxu0 %v828_v3 }
 0x2a8   :  { %773 = vmatpush1.bf16.msra.mxu0 %v772_v25 }
 0x2a9   :  { %774 = vmatprep.subr.bf16.mxu0 %v828_v3 }
 0x2ac   :  { %776 = vmatpush1.bf16.msra.mxu0 %v775_v28 }
 0x2ad   :  { %777 = vmatprep.subr.bf16.mxu0 %v828_v3 }
 0x2b0   :  { %779 = vmatpush1.bf16.msra.mxu0 %v778_v31 }
 0x2b1   :  { %780 = vmatprep.subr.bf16.mxu0 %v828_v3 }
 0x2b4   :  { %782 = vmatpush1.bf16.msra.mxu0 %v781_v34 }
 0x2b5   :  { %783 = vmatprep.subr.bf16.mxu0 %v828_v3 }
 0x2b8   :  { %785 = vmatpush1.bf16.msra.mxu0 %v784_v37 }
 0x2b9   :  { %786 = vmatprep.subr.bf16.mxu0 %v828_v3 }
 0x2bc   :  { %788 = vmatpush1.bf16.msra.mxu0 %v787_v40 }
 0x2bd   :  { %789 = vmatprep.subr.bf16.mxu0 %v828_v3 }
 0x2c0   :  { %791 = vmatpush1.bf16.msra.mxu0 %v790_v43 }
 0x2c1   :  { %792 = vmatprep.subr.bf16.mxu0 %v828_v3  ;;  %v562_v3 = vld [vmem:[%s1164_s10] ss:$0 sm:$0xff] }
 0x2c4   :  { %794 = vmatpush1.bf16.msra.mxu0 %v793_v46 }
 0x376   :  { %v316_v16 = vpop.f32.mrb[0].mxu0 }
 0x377   :  { %v317_v17 = vadd.f32 %v558_v15, %v316_v16  ;;  %v674_v18 = vpop.f32.mrb[1].mxu0 }
 0x379   :  { %321 = vrot.lane.b32.xlu1 %v317_v17, %s833_s17 }
 0x3eb   :  { %v322_v19 = vpop.permute.xlu1 %321 }
 0x3ec   :  { %v324_v20 = vsel %vm246_vm3, %v226_v54, %v322_v19 }
 0x3ed   :  { %706 = vmatmul.mubr.msk.f32.vlgmr.msra.gmra.mrb[4].mxu1 %vm347_vm4, %v324_v20 }
 0x4c0   :  { %v417_v48 = vpop.f32.mrb[4].mxu1 }
 0x4c1   :  { %v418_v49 = vadd.f32 %v560_v47, %v417_v48  ;;  %v707_v50 = vpop.f32.mrb[5].mxu1 }
 0x4c3   :  { %422 = vrot.lane.b32.xlu1 %v418_v49, %s834_s27 }
 0x535   :  { %v423_v51 = vpop.permute.xlu1 %422 }
 0x536   :  { %v425_v52 = vsel %vm347_vm4, %v324_v20, %v423_v51  ;;  %563 = vmatprep.mubr.msk.f32.mxu0 %vm451_vm5, %v423_v51 }
 0x537   :  { %519 = vmatmul.mubr.f32.vlgmr.msra.gmra.mrb[2].mxu0 %v425_v52 }
 0x60a   :  { %v520_v53 = vpop.f32.mrb[2].mxu0 }
 0x60b   :  { %v521_v54 = vadd.f32 %v562_v3, %v520_v53  ;;  %v522_v55 = vpop.f32.mrb[3].mxu0 }
 0x60d   :  { %525 = vrot.lane.b32.xlu0 %v521_v54, %s835_s29 }
 0x67f   :  { %v526_v56 = vpop.permute.xlu0 %525 }
 0x680   :  { %v528_v57 = vsel %vm451_vm5, %v423_v51, %v526_v56 }
 0x681   :  { %v530_v58 = vsel %vm529_vm6, %v528_v57, 0.0 }
 0x682   :  { %v565_v59 = vpack.c.bf16 %v530_v58, %v425_v52 }
 0x684   :  { %539 = vst [vmem:[#allocation2] sm:$0xff] %v565_v59 }
 0x685   :  { %815 = shalt.err (!%p812_p4)
}
 0x686   :  { %s816_s13 = scalar_lea.hbm %s1165_s11, 128 }
 0x687   :  { %p817_p5 = scmp.ne.s32.totalorder %s1165_s11, %s816_s13  ;;  %p820_p6 = scmp.lt.u32.totalorder %s816_s13, %s1165_s11 }
 0x689   :  { %p822_p7 = pnand %p820_p6, %p817_p5 }
 0x68b   :  { %825 = shalt.err (!%p822_p7)
}
 0x68c   :  { %549 = dma.vmem_to_hbm [thread:$0]  %s547_s30, 128, %s1165_s11, [#allocation3]  }
 0x68d   :  { %826 = dma.done.wait [#allocation3], 128  }
 0x68e   :  { %827 = vsyncadd [#allocation3], 4294967168 }
 0x68f   :  { %553 = vsyncpa [#allocation3], 1 }

</bundles_post_ra>
